<compile_context>
chip_gen: v6e
topology: v6e:2x2x1
jax: 0.10.0
libtpu: 0.0.40
codegen_flags: <defaults>
</compile_context>

<pallas_src>
import jax
import jax.numpy as jnp
from jax.experimental import pallas as pl
from jax.experimental.pallas import tpu as pltpu

raw_text = ('We are about to study the idea of a computational process.\n'
            'Computational processes are abstract beings that inhabit computers.\n'
            'As they evolve, processes manipulate other abstract things called data.\n'
            'The evolution of a process is directed by a pattern of rules\n'
            'called a program. People create programs to direct processes. In effect,\n'
            'we conjure the spirits of the computer with our spells.').split()

vocab = sorted(set(raw_text))          # sorted -> deterministic word->index map
vocab_size = len(vocab)
word_to_ix = {w: i for i, w in enumerate(vocab)}

LANE = 128  # lane width / vocab-padding quantum


def cbow_kernel(idx_ref, emb_ref, wt_ref, b_ref, out_ref):
    """Per batch-tile: one-hot counts -> summed embeds -> linear -> log_softmax."""
    tb, n_ctx = idx_ref.shape
    v_pad = emb_ref.shape[0]

    # One-hot context counts (tb, v_pad) built on the VPU.
    idx = idx_ref[...]                                            # (tb, n_ctx) int32
    col = jax.lax.broadcasted_iota(jnp.int32, (tb, v_pad), 1)
    counts = jnp.zeros((tb, v_pad), jnp.float32)
    for c in range(n_ctx):                                        # tiny static loop
        counts = counts + (idx[:, c:c + 1] == col).astype(jnp.float32)

    # Summed context embeddings via MXU: (tb, v_pad) @ (v_pad, D) -> (tb, D).
    s = jnp.dot(counts, emb_ref[...], preferred_element_type=jnp.float32)

    # Linear layer; weight was pre-transposed to (D, v_pad) -> canonical MXU form.
    logits = jnp.dot(s, wt_ref[...], preferred_element_type=jnp.float32) + b_ref[...]

    # Numerically-stable log_softmax; padded vocab lanes carry -1e30 bias, so
    # they contribute exp()==0 and never win the max.
    m = jnp.max(logits, axis=-1, keepdims=True)
    z = logits - m
    lse = jnp.log(jnp.sum(jnp.exp(z), axis=-1, keepdims=True))
    out_ref[...] = z - lse


def cbow_forward_batched(idx_batch, emb_table, linear_w, linear_b, *, tile_b=128):
    """idx_batch: (B, n_ctx) int32 -> (B, V) log-probabilities."""
    B, n_ctx = idx_batch.shape
    V, D = emb_table.shape
    v_pad = ((V + LANE - 1) // LANE) * LANE
    b_pad = ((B + tile_b - 1) // tile_b) * tile_b

    # One-time (outside-kernel) layout prep: pad vocab to a lane multiple,
    # transpose W to (D, V_pad), mask padded bias lanes with -1e30.
    emb_p = jnp.zeros((v_pad, D), jnp.float32).at[:V, :].set(emb_table)
    wt_p = jnp.zeros((D, v_pad), jnp.float32).at[:, :V].set(linear_w.T)
    bias_p = jnp.full((1, v_pad), -1e30, jnp.float32).at[:, :V].set(
        linear_b.reshape(1, V))
    idx_p = jnp.zeros((b_pad, n_ctx), jnp.int32).at[:B, :].set(idx_batch)

    out = pl.pallas_call(
        cbow_kernel,
        out_shape=jax.ShapeDtypeStruct((b_pad, v_pad), jnp.float32),
        grid_spec=pltpu.PrefetchScalarGridSpec(
            num_scalar_prefetch=0,
            grid=(b_pad // tile_b,),
            in_specs=[
                pl.BlockSpec((tile_b, n_ctx), lambda i: (i, 0)),   # context ids
                pl.BlockSpec((v_pad, D), lambda i: (0, 0)),        # embedding table
                pl.BlockSpec((D, v_pad), lambda i: (0, 0)),        # W^T (D, V_pad)
                pl.BlockSpec((1, v_pad), lambda i: (0, 0)),        # masked bias
            ],
            out_specs=pl.BlockSpec((tile_b, v_pad), lambda i: (i, 0)),
        ),
        compiler_params=pltpu.CompilerParams(
            dimension_semantics=("parallel",)),   # batch axis -> both TCs on v7x
    )(idx_p, emb_p, wt_p, bias_p)
    return out[:B, :V]


def cbow_forward(indices, emb_table, linear_w, linear_b):
    """Exact original-module semantics: one context -> (1, vocab_size) log-probs."""
    return cbow_forward_batched(indices.reshape(1, -1), emb_table, linear_w, linear_b)


def cbow_reference_batched(idx_batch, emb_table, linear_w, linear_b):
    embeds = jnp.sum(emb_table[idx_batch], axis=1)                # (B, D)
    logits = embeds @ linear_w.T + linear_b.reshape(1, -1)        # (B, V)
    return jax.nn.log_softmax(logits, axis=-1)


if __name__ == "__main__":
    embedding_dim = 16
    context_size = 2
    n_ctx = 2 * context_size

    key = jax.random.PRNGKey(0)
    k_emb, k_w, k_b = jax.random.split(key, 3)

    # Deterministic parameter init (shapes from the module's __init__).
    emb_table = jax.random.normal(k_emb, (vocab_size, embedding_dim), jnp.float32)
    bound = 1.0 / (embedding_dim ** 0.5)
    linear_w = jax.random.uniform(k_w, (vocab_size, embedding_dim), jnp.float32,
                                  -bound, bound)
    linear_b = jax.random.uniform(k_b, (1, vocab_size), jnp.float32, -bound, bound)

    # Build every CBOW context from the corpus, cycle to a batch of 256
    # (2 grid steps of 128 rows each).
    contexts = []
    for t in range(context_size, len(raw_text) - context_size):
        ctx_words = [raw_text[t - 2], raw_text[t - 1],
                     raw_text[t + 1], raw_text[t + 2]]
        contexts.append([word_to_ix[w] for w in ctx_words])
    B = 256
    contexts = (contexts * ((B + len(contexts) - 1) // len(contexts)))[:B]
    idx_batch = jnp.array(contexts, dtype=jnp.int32)

    # Batched kernel.
    log_probs = cbow_forward_batched(idx_batch, emb_table, linear_w, linear_b)
    log_probs = jax.block_until_ready(log_probs)
    ref = cbow_reference_batched(idx_batch, emb_table, linear_w, linear_b)
    assert log_probs.shape == (B, vocab_size)
    assert jnp.allclose(log_probs, ref, atol=2e-4, rtol=2e-4)

    # Single-example path (matches the original forward's (1, V) output).
    single = cbow_forward(idx_batch[0], emb_table, linear_w, linear_b)
    single = jax.block_until_ready(single)
    assert single.shape == (1, vocab_size)
    assert jnp.allclose(single, ref[0:1], atol=2e-4, rtol=2e-4)

    print("KERNEL_OK")
</pallas_src>

<mosaic_0001>
module attributes {stable_mosaic.version = 11 : i64} {
  func.func @cbow_kernel(%arg0: i32, %arg1: memref<128x4xi32, #tpu.memory_space<vmem>>, %arg2: memref<128x16xf32, #tpu.memory_space<vmem>>, %arg3: memref<16x128xf32, #tpu.memory_space<vmem>>, %arg4: memref<1x128xf32, #tpu.memory_space<vmem>>, %arg5: memref<128x128xf32, #tpu.memory_space<vmem>>) attributes {dimension_semantics = [#tpu.dimension_semantics<parallel>], iteration_bounds = array<i64: 2>, scalar_prefetch = 0 : i64, scratch_operands = 0 : i64, tpu.core_type = #tpu.core_type<tc>, window_params = [{transform_indices = @transform_0, window_bounds = array<i64: 128, 4>}, {pipeline_mode = #tpu.pipeline_mode<synchronous>, transform_indices = @transform_1, window_bounds = array<i64: 128, 16>}, {pipeline_mode = #tpu.pipeline_mode<synchronous>, transform_indices = @transform_2, window_bounds = array<i64: 16, 128>}, {pipeline_mode = #tpu.pipeline_mode<synchronous>, transform_indices = @transform_3, window_bounds = array<i64: 1, 128>}, {transform_indices = @transform_4, window_bounds = array<i64: 128, 128>}]} {
    %c0 = arith.constant 0 : index
    %c0_0 = arith.constant 0 : index
    %0 = vector.load %arg1[%c0, %c0_0] : memref<128x4xi32, #tpu.memory_space<vmem>>, vector<128x4xi32>
    %1 = tpu.iota {dimensions = array<i32: 1>} : vector<128x128xi32>
    %cst = arith.constant 0.000000e+00 : f32
    %2 = vector.broadcast %cst : f32 to vector<128x128xf32>
    %3 = vector.extract_strided_slice %0 {offsets = [0, 0], sizes = [128, 1], strides = [1, 1]} : vector<128x4xi32> to vector<128x1xi32>
    %4 = vector.broadcast %3 : vector<128x1xi32> to vector<128x128xi32>
    %5 = arith.cmpi eq, %4, %1 : vector<128x128xi32>
    %6 = arith.extui %5 : vector<128x128xi1> to vector<128x128xi32>
    %7 = arith.sitofp %6 : vector<128x128xi32> to vector<128x128xf32>
    %8 = arith.addf %2, %7 : vector<128x128xf32>
    %9 = vector.extract_strided_slice %0 {offsets = [0, 1], sizes = [128, 1], strides = [1, 1]} : vector<128x4xi32> to vector<128x1xi32>
    %10 = vector.broadcast %9 : vector<128x1xi32> to vector<128x128xi32>
    %11 = arith.cmpi eq, %10, %1 : vector<128x128xi32>
    %12 = arith.extui %11 : vector<128x128xi1> to vector<128x128xi32>
    %13 = arith.sitofp %12 : vector<128x128xi32> to vector<128x128xf32>
    %14 = arith.addf %8, %13 : vector<128x128xf32>
    %15 = vector.extract_strided_slice %0 {offsets = [0, 2], sizes = [128, 1], strides = [1, 1]} : vector<128x4xi32> to vector<128x1xi32>
    %16 = vector.broadcast %15 : vector<128x1xi32> to vector<128x128xi32>
    %17 = arith.cmpi eq, %16, %1 : vector<128x128xi32>
    %18 = arith.extui %17 : vector<128x128xi1> to vector<128x128xi32>
    %19 = arith.sitofp %18 : vector<128x128xi32> to vector<128x128xf32>
    %20 = arith.addf %14, %19 : vector<128x128xf32>
    %21 = vector.extract_strided_slice %0 {offsets = [0, 3], sizes = [128, 1], strides = [1, 1]} : vector<128x4xi32> to vector<128x1xi32>
    %22 = vector.broadcast %21 : vector<128x1xi32> to vector<128x128xi32>
    %23 = arith.cmpi eq, %22, %1 : vector<128x128xi32>
    %24 = arith.extui %23 : vector<128x128xi1> to vector<128x128xi32>
    %25 = arith.sitofp %24 : vector<128x128xi32> to vector<128x128xf32>
    %26 = arith.addf %20, %25 : vector<128x128xf32>
    %c0_1 = arith.constant 0 : index
    %c0_2 = arith.constant 0 : index
    %27 = vector.load %arg2[%c0_1, %c0_2] : memref<128x16xf32, #tpu.memory_space<vmem>>, vector<128x16xf32>
    %cst_3 = arith.constant dense<0.000000e+00> : vector<128x16xf32>
    %28 = tpu.matmul %26, %27, %cst_3 {dimension_numbers = #tpu.dot_dimension_numbers<[1], [0], [0], [1], [0, 0, 1, 1], [], []>} : vector<128x128xf32>, vector<128x16xf32>, vector<128x16xf32> -> vector<128x16xf32>
    %c0_4 = arith.constant 0 : index
    %c0_5 = arith.constant 0 : index
    %29 = vector.load %arg3[%c0_4, %c0_5] : memref<16x128xf32, #tpu.memory_space<vmem>>, vector<16x128xf32>
    %cst_6 = arith.constant dense<0.000000e+00> : vector<128x128xf32>
    %30 = tpu.matmul %28, %29, %cst_6 {dimension_numbers = #tpu.dot_dimension_numbers<[1], [0], [0], [1], [0, 0, 1, 1], [], []>} : vector<128x16xf32>, vector<16x128xf32>, vector<128x128xf32> -> vector<128x128xf32>
    %c0_7 = arith.constant 0 : index
    %c0_8 = arith.constant 0 : index
    %31 = vector.load %arg4[%c0_7, %c0_8] : memref<1x128xf32, #tpu.memory_space<vmem>>, vector<1x128xf32>
    %32 = vector.broadcast %31 : vector<1x128xf32> to vector<128x128xf32>
    %33 = arith.addf %30, %32 : vector<128x128xf32>
    %cst_9 = arith.constant dense<0xFF800000> : vector<128xf32>
    %34 = vector.multi_reduction <maximumf>, %33, %cst_9 [1] : vector<128x128xf32> to vector<128xf32>
    %35 = vector.shape_cast %34 : vector<128xf32> to vector<128x1xf32>
    %36 = vector.broadcast %35 : vector<128x1xf32> to vector<128x128xf32>
    %37 = arith.subf %33, %36 : vector<128x128xf32>
    %38 = math.exp %37 : vector<128x128xf32>
    %cst_10 = arith.constant dense<0.000000e+00> : vector<128xf32>
    %39 = vector.multi_reduction <add>, %38, %cst_10 [1] : vector<128x128xf32> to vector<128xf32>
    %40 = vector.shape_cast %39 : vector<128xf32> to vector<128x1xf32>
    %41 = math.log %40 : vector<128x1xf32>
    %42 = vector.broadcast %41 : vector<128x1xf32> to vector<128x128xf32>
    %43 = arith.subf %37, %42 : vector<128x128xf32>
    %c0_11 = arith.constant 0 : index
    %c0_12 = arith.constant 0 : index
    %44 = vector.load %arg5[%c0_11, %c0_12] : memref<128x128xf32, #tpu.memory_space<vmem>>, vector<128x128xf32>
    tpu.vector_store %arg5[%c0_11, %c0_12], %43 {strides = array<i32>} : memref<128x128xf32, #tpu.memory_space<vmem>>, vector<128x128xf32>,
    return
  }
  func.func @transform_0(%arg0: i32) -> (i32, i32) {
    %c0_i32 = arith.constant 0 : i32
    %c0_i32_0 = arith.constant 0 : i32
    return %arg0, %c0_i32 : i32, i32
  }
  func.func @transform_1(%arg0: i32) -> (i32, i32) {
    %c0_i32 = arith.constant 0 : i32
    %c0_i32_0 = arith.constant 0 : i32
    %c0_i32_1 = arith.constant 0 : i32
    return %c0_i32, %c0_i32_0 : i32, i32
  }
  func.func @transform_2(%arg0: i32) -> (i32, i32) {
    %c0_i32 = arith.constant 0 : i32
    %c0_i32_0 = arith.constant 0 : i32
    %c0_i32_1 = arith.constant 0 : i32
    return %c0_i32, %c0_i32_0 : i32, i32
  }
  func.func @transform_3(%arg0: i32) -> (i32, i32) {
    %c0_i32 = arith.constant 0 : i32
    %c0_i32_0 = arith.constant 0 : i32
    %c0_i32_1 = arith.constant 0 : i32
    return %c0_i32, %c0_i32_0 : i32, i32
  }
  func.func @transform_4(%arg0: i32) -> (i32, i32) {
    %c0_i32 = arith.constant 0 : i32
    %c0_i32_0 = arith.constant 0 : i32
    return %arg0, %c0_i32 : i32, i32
  }
}

</mosaic_0001>

<bundles_post_ra>
// kernel: tpu_custom_call.1
= control target key start
LH: loop header
LB: loop body
LE: loop exit
PB: predicated region body
PF: predicated region fallthrough
CT: control target
= control target key end

     0   :  { %9 = vsyncpa [#allocation3], 0  ;;  %s2375_s0 = inlined_call_operand.vmem [shape: s32[256,4], index: 0, kind: input, shape index: {}]   ;;  %s2376_s1 = inlined_call_operand.vmem [shape: f32[128,16], index: 1, kind: input, shape index: {}]   ;;  %s2377_s2 = inlined_call_operand.vmem [shape: f32[16,128], index: 2, kind: input, shape index: {}]   ;;  %s2378_s3 = inlined_call_operand.vmem [shape: f32[1,128], index: 3, kind: input, shape index: {}]   ;;  %s2379_s4 = inlined_call_operand.hbm [shape: f32[256,128], index: 4, kind: output, shape index: {}]  }
   0x1   :  { %11 = vsyncpa [#allocation3 + $0x1], 0  ;;  %s1758_s15 = smov 0   ;;  %s1760_s16 = smov 0  }
   0x2   :  { %s1762_s17 = smov 0   ;;  %s1764_s18 = smov 0  }
   0x3 LB: > { %s1779_s19 = sadd.s32 4294967295, %s1723_s18   ;;  %s1281_s20 = sadd.s32 4294967294, %s1723_s18   ;;  %s1723_s18 = sphi %s1764_s18, %s2385_s18   ;;  %s1719_s17 = sphi %s1762_s17, %s2384_s17   ;;  %s1715_s16 = sphi %s1760_s16, %s2383_s16   ;;  %s1711_s15 = sphi %s1758_s15, %s2382_s15  }
   0x4   : > { %s1783_s21 = sadd.s32 1, %s1723_s18   ;;  %s113_s22 = sadd.s32 1, %s1719_s17 }
   0x5   : > { %s110_s23 = ssub.s32 %s1723_s18, %s1783_s21  ;;  %p123_p0 = scmp.ne.s32.totalorder %s1719_s17, %s1715_s16 }
   0x6   : > { %p111_p1 = scmp.eq.s32.totalorder %s110_s23, 0  ;;  %p124_p2 = scmp.eq.s32.totalorder %s1779_s19, 1 }
   0x7   : > { %p129_p3 = scmp.ne.s32.totalorder %s1715_s16, %s1711_s15  ;;  %p130_p4 = scmp.eq.s32.totalorder %s1281_s20, 1 }
   0x8   : > { %s1794_s24 = scalar_select %p111_p1, %s1719_s17, %s113_s22  }
   0x9   : > { %p1796_p5 = por %p124_p2, %p123_p0  ;;  %p1800_p6 = por %p130_p4, %p129_p3 }
   0xa   : > { %p1284_p7 = scmp.ge.s32.totalorder %s1723_s18, 1  ;;  %p166_p8 = scmp.lt.s32.totalorder %s1723_s18, 3 }
   0xc   : > { %p167_p9 = pnand %p1284_p7, %p166_p8 }
   0xd   : > { %s1286_s27 = sshll.u32 (!%p167_p9), %s1779_s19, 4  ;;  %s189_s11 = sand.u32 (!%p167_p9), 1, %s1715_s16  }
   0xe   : > { %170 = sbr.rel (%p167_p9) target bundleno = 1064 (0x428), region = 36  ;;  %p193_p10 = scmp.lt.s32.totalorder (!%p167_p9), %s1286_s27, 31 }
   0xf   : > { %s1285_s12 = sshll.u32 (!%p167_p9), %s189_s11, 7  ;;  %s1374_s14 = sshll.u32 (!%p167_p9), %s1779_s19, 11 }
  0x10   : > { %s2291_s13 = scalar_lea.vmem (!%p167_p9), [#allocation2], %s1285_s12  ;;  %s2335_s19 = scalar_lea.sflag (!%p167_p9), [#allocation3], %s189_s11 }
  0x11   : > { %s1219_s20 = sshll.u32 (!%p167_p9), %s2291_s13, 4  ;;  %s1730_s29 = smov (!%p167_p9), [#allocation2]   ;;  %s2328_s20 = int_to_ptr.vmem [resolvable:$true] %s1219_s20 }
  0x12   : > { %s1667_s30 = sshll.u32 (!%p167_p9), %s1730_s29, 4  ;;  %s1668_s30 = int_to_ptr.vmem [resolvable:$false] %s1667_s30 }
  0x13   : > { %v1725_v0 = vmov 0   ;;  %s2387_s27 = smov (!%p193_p10, %s1286_s27), 31  ;;  %v1726_v3 = vmov 1   ;;  %v1727_v4 = vmov 2   ;;  %v1728_v5 = vmov 3   ;;  %v680_v12 = vld [vmem:[%s2376_s1 + $0x78] sm:$0xff]  ;;  %p1670_p0 = scmp.lt.s32.totalorder %s2328_s20, %s1668_s30 }
  0x14   : > { %1557 = vset.pattern.permute.xlu1 %v1725_v0  ;;  %1555 = vset.pattern.permute.xlu0 %v1725_v0  ;;  %s1287_s28 = sshll.u32 %s2387_s27, 3  ;;  %v679_v13 = vld [vmem:[%s2376_s1 + $0x70] sm:$0xff]  ;;  %v678_v15 = vld [vmem:[%s2376_s1 + $0x68] sm:$0xff]  ;;  %v677_v16 = vld [vmem:[%s2376_s1 + $0x60] sm:$0xff]  ;;  %v215_v35 = vlaneseq  ;;  %v1729_v41 = vmov 0.0   ;;  %s2326_s27 = scalar_lea.hbm %s2379_s4, %s1374_s14 }
  0x15   : > { %s1812_s5 = scalar_lea.vmem %s2375_s0, %s1287_s28  ;;  %1425 = vmatprep.subr.mxu0 %v680_v12  ;;  %v676_v18 = vld [vmem:[%s2376_s1 + $0x58] sm:$0xff]  ;;  %v675_v19 = vld [vmem:[%s2376_s1 + $0x50] sm:$0xff]  ;;  %v674_v21 = vld [vmem:[%s2376_s1 + $0x48] sm:$0xff]  ;;  %s1663_s28 = scalar_lea.vmem %s2328_s20, 2048 }
  0x16   : > { %v1815_v1 = vld [vmem:[%s1812_s5 + $0x8] sm:$0xff]  ;;  %v199_v2 = vld [vmem:[%s1812_s5] sm:$0xff]  ;;  %v201_v6 = vld [vmem:[%s1812_s5 + $0x10] sm:$0xff]  ;;  %1426 = vmatpush3.msra.mxu0 %v680_v12  ;;  %v1974_v38 = vand.u32 127, %v215_v35  ;;  %p1664_p11 = scmp.ne.s32.totalorder %s2328_s20, %s1663_s28 }
  0x17   : > { %221 = vperm.xlu1 %1557, %v1815_v1   ;;  %218 = vperm.xlu0 %1555, %v199_v2   ;;  %v1829_v7 = vld [vmem:[%s1812_s5 + $0x18] sm:$0xff]  ;;  %v1833_v8 = vld [vmem:[%s1812_s5 + $0x20] sm:$0xff]  ;;  %v1839_v9 = vld [vmem:[%s1812_s5 + $0x28] sm:$0xff] }
  0x18   : > { %v1845_v10 = vld [vmem:[%s1812_s5 + $0x30] sm:$0xff]  ;;  %v1850_v11 = vld [vmem:[%s1812_s5 + $0x38] sm:$0xff]  ;;  %v1861_v14 = vld [vmem:[%s1812_s5 + $0x40] sm:$0xff]  ;;  %1427 = vmatprep.subr.mxu0 %v679_v13  ;;  %p1665_p12 = pnand %p1664_p11, %p1796_p5 }
  0x19   : > { %1428 = vmatpush3.msra.mxu0 %v679_v13  ;;  %v1872_v17 = vld [vmem:[%s1812_s5 + $0x48] sm:$0xff]  ;;  %v1884_v20 = vld [vmem:[%s1812_s5 + $0x50] sm:$0xff]  ;;  %v673_v22 = vld [vmem:[%s2376_s1 + $0x40] sm:$0xff] }
  0x1a   : > { %1429 = vmatprep.subr.mxu0 %v678_v15  ;;  %v1896_v23 = vld [vmem:[%s1812_s5 + $0x58] sm:$0xff]  ;;  %v671_v25 = vld [vmem:[%s2376_s1 + $0x30] sm:$0xff]  ;;  %v1908_v26 = vld [vmem:[%s1812_s5 + $0x60] sm:$0xff]  ;;  %p1666_p13 = pneg %p1665_p12 }
  0x1b   : > { %1558 = vset.pattern.permute.xlu1 %v1726_v3  ;;  %1556 = vset.pattern.permute.xlu0 %v1726_v3  ;;  %v672_v24 = vld [vmem:[%s2376_s1 + $0x38] sm:$0xff]  ;;  %v670_v27 = vld [vmem:[%s2376_s1 + $0x28] sm:$0xff]  ;;  %v669_v28 = vld [vmem:[%s2376_s1 + $0x20] sm:$0xff] }
  0x1c   : > { %333 = vperm.xlu1 %1558, %v1815_v1   ;;  %330 = vperm.xlu0 %1556, %v199_v2   ;;  %v1919_v29 = vld [vmem:[%s1812_s5 + $0x68] sm:$0xff]  ;;  %v668_v30 = vld [vmem:[%s2376_s1 + $0x18] sm:$0xff]  ;;  %v667_v31 = vld [vmem:[%s2376_s1 + $0x10] sm:$0xff] }
  0x1d   : > { %1430 = vmatpush3.msra.mxu0 %v678_v15  ;;  %v666_v32 = vld [vmem:[%s2376_s1 + $0x8] sm:$0xff]  ;;  %v665_v33 = vld [vmem:[%s2376_s1] sm:$0xff]  ;;  %v1956_v34 = vld [vmem:[%s1812_s5 + $0x78] sm:$0xff] }
  0x1e   : > { %1431 = vmatprep.subr.mxu0 %v677_v16  ;;  %v213_v63 = vld [vmem:[%s1812_s5 + $0x70] sm:$0xff]  ;;  %s1669_s5 = scalar_lea.vmem %s1668_s30, 4096 }
  0x1f   : > { %1432 = vmatpush3.msra.mxu0 %v677_v16  ;;  %p1671_p1 = scmp.lt.s32.totalorder %s1669_s5, %s1663_s28 }
  0x20   : > { %1559 = vset.pattern.permute.xlu1 %v1727_v4  ;;  %1562 = vset.pattern.permute.xlu0 %v1728_v5 }
  0x21   : > { %442 = vperm.xlu1 %1559, %v199_v2   ;;  %554 = vperm.xlu0 %1562, %v199_v2   ;;  %p1672_p2 = por %p1671_p1, %p1670_p0 }
  0x22   : > { %1433 = vmatprep.subr.mxu0 %v676_v18 }
  0x23   : > { %1434 = vmatpush3.msra.mxu0 %v676_v18  ;;  %p1673_p3 = pnand %p1672_p2, %p1666_p13 }
  0x24   : > { %1435 = vmatprep.subr.mxu0 %v675_v19 }
  0x25   : > { %1560 = vset.pattern.permute.xlu1 %v1725_v0  ;;  %557 = vperm.xlu0 %1562, %v1815_v1  }
  0x26   : > { %224 = vperm.xlu1 %1560, %v201_v6   ;;  %1436 = vmatpush3.msra.mxu0 %v675_v19 }
  0x27   : > { %1437 = vmatprep.subr.mxu0 %v674_v21 }
  0x28   : > { %1438 = vmatpush3.msra.mxu0 %v674_v21 }
  0x29   : > { %560 = vperm.xlu0 %1562, %v201_v6   ;;  %1439 = vmatprep.subr.mxu0 %v673_v22 }
  0x2a   : > { %1561 = vset.pattern.permute.xlu1 %v1726_v3  ;;  %1440 = vmatpush3.msra.mxu0 %v673_v22 }
  0x2b   : > { %336 = vperm.xlu1 %1561, %v201_v6   ;;  %1441 = vmatprep.subr.mxu0 %v672_v24 }
  0x2c   : > { %1442 = vmatpush3.msra.mxu0 %v672_v24 }
  0x2d   : > { %563 = vperm.xlu0 %1562, %v1829_v7   ;;  %1443 = vmatprep.subr.mxu0 %v671_v25 }
  0x2e   : > { %1444 = vmatpush3.msra.mxu0 %v671_v25 }
  0x2f   : > { %1563 = vset.pattern.permute.xlu1 %v1725_v0  ;;  %1445 = vmatprep.subr.mxu0 %v670_v27 }
  0x30   : > { %227 = vperm.xlu1 %1563, %v1829_v7   ;;  %1446 = vmatpush3.msra.mxu0 %v670_v27 }
  0x31   : > { %566 = vperm.xlu0 %1562, %v1833_v8   ;;  %1447 = vmatprep.subr.mxu0 %v669_v28 }
  0x32   : > { %1448 = vmatpush3.msra.mxu0 %v669_v28 }
  0x33   : > { %1449 = vmatprep.subr.mxu0 %v668_v30 }
  0x34   : > { %1564 = vset.pattern.permute.xlu1 %v1726_v3  ;;  %1450 = vmatpush3.msra.mxu0 %v668_v30 }
  0x35   : > { %339 = vperm.xlu1 %1564, %v1829_v7   ;;  %569 = vperm.xlu0 %1562, %v1839_v9  }
  0x36   : > { %1451 = vmatprep.subr.mxu0 %v667_v31 }
  0x37   : > { %1452 = vmatpush3.msra.mxu0 %v667_v31 }
  0x38   : > { %1453 = vmatprep.subr.mxu0 %v666_v32 }
  0x39   : > { %1565 = vset.pattern.permute.xlu1 %v1727_v4  ;;  %572 = vperm.xlu0 %1562, %v1845_v10  }
  0x3a   : > { %448 = vperm.xlu1 %1565, %v201_v6   ;;  %1454 = vmatpush3.msra.mxu0 %v666_v32 }
  0x3b   : > { %1455 = vmatprep.subr.mxu0 %v665_v33 }
  0x3c   : > { %1456 = vmatpush3.msra.mxu0 %v665_v33 }
  0x3d   : > { %575 = vperm.xlu0 %1562, %v1850_v11  }
  0x3e   : > { %1566 = vset.pattern.permute.xlu1 %v1725_v0 }
  0x3f   : > { %230 = vperm.xlu1 %1566, %v1833_v8  }
  0x41   : > { %578 = vperm.xlu0 %1562, %v1861_v14  }
  0x43   : > { %1567 = vset.pattern.permute.xlu1 %v1726_v3 }
  0x44   : > { %342 = vperm.xlu1 %1567, %v1833_v8  }
  0x45   : > { %581 = vperm.xlu0 %1562, %v1872_v17  }
  0x48   : > { %1568 = vset.pattern.permute.xlu1 %v1725_v0 }
  0x49   : > { %233 = vperm.xlu1 %1568, %v1839_v9   ;;  %584 = vperm.xlu0 %1562, %v1884_v20  }
  0x4d   : > { %1569 = vset.pattern.permute.xlu1 %v1726_v3  ;;  %587 = vperm.xlu0 %1562, %v1896_v23  }
  0x4e   : > { %345 = vperm.xlu1 %1569, %v1839_v9  }
  0x51   : > { %590 = vperm.xlu0 %1562, %v1908_v26  }
  0x52   : > { %1570 = vset.pattern.permute.xlu1 %v1727_v4 }
  0x53   : > { %454 = vperm.xlu1 %1570, %v1833_v8  }
  0x55   : > { %593 = vperm.xlu0 %1562, %v1919_v29  }
  0x57   : > { %1571 = vset.pattern.permute.xlu1 %v1725_v0 }
  0x58   : > { %236 = vperm.xlu1 %1571, %v1845_v10  }
  0x59   : > { %1595 = vset.pattern.permute.xlu0 %v1727_v4 }
  0x5a   : > { %445 = vperm.xlu0 %1595, %v1815_v1  }
  0x5c   : > { %1572 = vset.pattern.permute.xlu1 %v1726_v3 }
  0x5d   : > { %348 = vperm.xlu1 %1572, %v1845_v10  }
  0x5e   : > { %451 = vperm.xlu0 %1595, %v1829_v7  }
  0x61   : > { %1573 = vset.pattern.permute.xlu1 %v1725_v0 }
  0x62   : > { %239 = vperm.xlu1 %1573, %v1850_v11   ;;  %457 = vperm.xlu0 %1595, %v1839_v9  }
  0x66   : > { %1574 = vset.pattern.permute.xlu1 %v1726_v3  ;;  %463 = vperm.xlu0 %1595, %v1850_v11  }
  0x67   : > { %351 = vperm.xlu1 %1574, %v1850_v11  }
  0x6a   : > { %469 = vperm.xlu0 %1595, %v1872_v17  }
  0x6b   : > { %1575 = vset.pattern.permute.xlu1 %v1727_v4 }
  0x6c   : > { %460 = vperm.xlu1 %1575, %v1845_v10  }
  0x6e   : > { %475 = vperm.xlu0 %1595, %v1896_v23  }
  0x70   : > { %1576 = vset.pattern.permute.xlu1 %v1725_v0 }
  0x71   : > { %242 = vperm.xlu1 %1576, %v1861_v14  }
  0x72   : > { %481 = vperm.xlu0 %1595, %v1919_v29  }
  0x75   : > { %1577 = vset.pattern.permute.xlu1 %v1726_v3 }
  0x76   : > { %354 = vperm.xlu1 %1577, %v1861_v14   ;;  %487 = vperm.xlu0 %1595, %v1956_v34  }
  0x7a   : > { %1578 = vset.pattern.permute.xlu1 %v1725_v0  ;;  %1598 = vset.pattern.permute.xlu0 %v1728_v5 }
  0x7b   : > { %245 = vperm.xlu1 %1578, %v1872_v17  }
  0x7f   : > { %1579 = vset.pattern.permute.xlu1 %v1726_v3 }
  0x80   : > { %357 = vperm.xlu1 %1579, %v1872_v17  }
  0x84   : > { %1580 = vset.pattern.permute.xlu1 %v1727_v4 }
  0x85   : > { %466 = vperm.xlu1 %1580, %v1861_v14  }
  0x89   : > { %1581 = vset.pattern.permute.xlu1 %v1725_v0 }
  0x8a   : > { %248 = vperm.xlu1 %1581, %v1884_v20  }
  0x8e   : > { %1582 = vset.pattern.permute.xlu1 %v1726_v3 }
  0x8f   : > { %360 = vperm.xlu1 %1582, %v1884_v20  }
  0x92   : > { %v1972_v36 = vpop.permute.xlu1 %221  ;;  %v219_v37 = vpop.permute.xlu0 %218 }
  0x93   : > { %1583 = vset.pattern.permute.xlu1 %v1725_v0  ;;  %vm265_vm0 = vcmp.eq.s32.totalorder %v219_v37, %v1974_v38  ;;  %vm266_vm5 = vcmp.eq.s32.totalorder %v1972_v36, %v1974_v38 }
  0x94   : > { %251 = vperm.xlu1 %1583, %v1896_v23   ;;  %v1288_v42 = vsel %vm265_vm0, 1.0, %v1729_v41 }
  0x97   : > { %v1979_v39 = vpop.permute.xlu1 %333  ;;  %v331_v40 = vpop.permute.xlu0 %330 }
  0x98   : > { %1584 = vset.pattern.permute.xlu1 %v1726_v3  ;;  %vm377_vm1 = vcmp.eq.s32.totalorder %v331_v40, %v1974_v38  ;;  %vm378_vm4 = vcmp.eq.s32.totalorder %v1979_v39, %v1974_v38 }
  0x99   : > { %363 = vperm.xlu1 %1584, %v1896_v23   ;;  %v1304_v43 = vsel %vm377_vm1, 1.0, %v1729_v41 }
  0x9a   : > { %v425_v44 = vadd.f32 %v1304_v43, %v1288_v42 }
  0x9c   : > { %v443_v45 = vpop.permute.xlu1 %442  ;;  %v555_v46 = vpop.permute.xlu0 %554 }
  0x9d   : > { %vm489_vm2 = vcmp.eq.s32.totalorder %v443_v45, %v1974_v38  ;;  %1585 = vset.pattern.permute.xlu1 %v1727_v4  ;;  %vm601_vm3 = vcmp.eq.s32.totalorder %v555_v46, %v1974_v38 }
  0x9e   : > { %v1320_v47 = vsel %vm489_vm2, 1.0, %v1729_v41  ;;  %472 = vperm.xlu1 %1585, %v1884_v20   ;;  %v1336_v48 = vsel %vm601_vm3, 1.0, %v1729_v41 }
  0x9f   : > { %v537_v49 = vadd.f32 %v1320_v47, %v425_v44 }
  0xa0   : > { %v1992_v50 = vpop.permute.xlu0 %557 }
  0xa1   : > { %v225_v51 = vpop.permute.xlu1 %224  ;;  %v649_v52 = vadd.f32 %v1336_v48, %v537_v49  ;;  %vm602_vm9 = vcmp.eq.s32.totalorder %v1992_v50, %v1974_v38 }
  0xa2   : > { %1586 = vset.pattern.permute.xlu1 %v1725_v0  ;;  %vm267_vm7 = vcmp.eq.s32.totalorder %v225_v51, %v1974_v38  ;;  %v1337_v19 = vsel %vm602_vm9, 1.0, %v1729_v41 }
  0xa3   : > { %254 = vperm.xlu1 %1586, %v1908_v26   ;;  %1457 = vmatprep.mubr.f32.mxu0 %v649_v52  ;;  %v1290_v17 = vsel %vm267_vm7, 1.0, %v1729_v41 }
  0xa4   : > { %v1996_v53 = vpop.permute.xlu0 %560 }
  0xa5   : > { %vm603_vm11 = vcmp.eq.s32.totalorder %v1996_v53, %v1974_v38 }
  0xa6   : > { %v337_v54 = vpop.permute.xlu1 %336 }
  0xa7   : > { %1587 = vset.pattern.permute.xlu1 %v1726_v3  ;;  %vm379_vm6 = vcmp.eq.s32.totalorder %v337_v54, %v1974_v38 }
  0xa8   : > { %366 = vperm.xlu1 %1587, %v1908_v26   ;;  %v2000_v55 = vpop.permute.xlu0 %563  ;;  %v1306_v15 = vsel %vm379_vm6, 1.0, %v1729_v41 }
  0xa9   : > { %v427_v20 = vadd.f32 %v1306_v15, %v1290_v17  ;;  %vm604_vm15 = vcmp.eq.s32.totalorder %v2000_v55, %v1974_v38 }
  0xaa   : > { %v1339_v30 = vsel %vm604_vm15, 1.0, %v1729_v41 }
  0xab   : > { %v2002_v56 = vpop.permute.xlu1 %227 }
  0xac   : > { %1588 = vset.pattern.permute.xlu1 %v1725_v0  ;;  %v2005_v57 = vpop.permute.xlu0 %566  ;;  %vm268_vm0 = vcmp.eq.s32.totalorder %v2002_v56, %v1974_v38 }
  0xad   : > { %257 = vperm.xlu1 %1588, %v1919_v29   ;;  %v1291_v31 = vsel %vm268_vm0, 1.0, %v1729_v41  ;;  %vm605_vm3 = vcmp.eq.s32.totalorder %v2005_v57, %v1974_v38 }
  0xae   : > { %v1340_v43 = vsel %vm605_vm3, 1.0, %v1729_v41 }
  0xb0   : > { %v340_v58 = vpop.permute.xlu1 %339  ;;  %v2008_v59 = vpop.permute.xlu0 %569 }
  0xb1   : > { %1589 = vset.pattern.permute.xlu1 %v1726_v3  ;;  %vm380_vm12 = vcmp.eq.s32.totalorder %v340_v58, %v1974_v38  ;;  %vm606_vm6 = vcmp.eq.s32.totalorder %v2008_v59, %v1974_v38 }
  0xb2   : > { %369 = vperm.xlu1 %1589, %v1919_v29   ;;  %v1307_v23 = vsel %vm380_vm12, 1.0, %v1729_v41  ;;  %v1341_v49 = vsel %vm606_vm6, 1.0, %v1729_v41 }
  0xb3   : > { %v428_v35 = vadd.f32 %v1307_v23, %v1291_v31 }
  0xb4   : > { %v2012_v60 = vpop.permute.xlu0 %572 }
  0xb5   : > { %v449_v61 = vpop.permute.xlu1 %448 }
  0xb6   : > { %1590 = vset.pattern.permute.xlu1 %v1727_v4  ;;  %vm491_vm8 = vcmp.eq.s32.totalorder %v449_v61, %v1974_v38 }
  0xb7   : > { %478 = vperm.xlu1 %1590, %v1908_v26   ;;  %v1322_v18 = vsel %vm491_vm8, 1.0, %v1729_v41 }
  0xb8   : > { %v2016_v62 = vpop.permute.xlu0 %575  ;;  %v539_v24 = vadd.f32 %v1322_v18, %v427_v20 }
  0xba   : > { %v231_v1 = vpop.permute.xlu1 %230 }
  0xbb   : > { %1591 = vset.pattern.permute.xlu1 %v1725_v0  ;;  %vm269_vm13 = vcmp.eq.s32.totalorder %v231_v1, %v1974_v38 }
  0xbc   : > { %260 = vperm.xlu1 %1591, %v213_v63   ;;  %v2020_v2 = vpop.permute.xlu0 %578  ;;  %v1292_v26 = vsel %vm269_vm13, 1.0, %v1729_v41  ;;  %vm607_vm13 = vcmp.eq.s32.totalorder %v2012_v60, %v1974_v38 }
  0xbf   : > { %v343_v6 = vpop.permute.xlu1 %342 }
  0xc0   : > { %1592 = vset.pattern.permute.xlu1 %v1726_v3  ;;  %v2023_v7 = vpop.permute.xlu0 %581  ;;  %vm381_vm10 = vcmp.eq.s32.totalorder %v343_v6, %v1974_v38 }
  0xc1   : > { %372 = vperm.xlu1 %1592, %v213_v63   ;;  %v1308_v22 = vsel %vm381_vm10, 1.0, %v1729_v41 }
  0xc2   : > { %v429_v32 = vadd.f32 %v1308_v22, %v1292_v26 }
  0xc4   : > { %v2025_v8 = vpop.permute.xlu1 %233  ;;  %v2027_v9 = vpop.permute.xlu0 %584 }
  0xc5   : > { %1593 = vset.pattern.permute.xlu1 %v1725_v0  ;;  %v1305_v0 = vsel %vm378_vm4, 1.0, %v1729_v41  ;;  %vm270_vm4 = vcmp.eq.s32.totalorder %v2025_v8, %v1974_v38  ;;  %v1342_v8 = vsel %vm607_vm13, 1.0, %v1729_v41  ;;  %vm611_vm13 = vcmp.eq.s32.totalorder %v2027_v9, %v1974_v38  ;;  %v826_v9 = vld [vmem:[%s2377_s2] sm:$0xff] }
  0xc6   : > { %263 = vperm.xlu1 %1593, %v1956_v34   ;;  %v1293_v44 = vsel %vm270_vm4, 1.0, %v1729_v41 }
  0xc8   : > { %v2031_v10 = vpop.permute.xlu0 %587 }
  0xc9   : > { %v346_v11 = vpop.permute.xlu1 %345 }
  0xca   : > { %1594 = vset.pattern.permute.xlu1 %v1726_v3  ;;  %v1289_v3 = vsel %vm266_vm5, 1.0, %v1729_v41  ;;  %vm382_vm2 = vcmp.eq.s32.totalorder %v346_v11, %v1974_v38 }
  0xcb   : > { %375 = vperm.xlu1 %1594, %v1956_v34   ;;  %v426_v16 = vadd.f32 %v1305_v0, %v1289_v3  ;;  %v1309_v37 = vsel %vm382_vm2, 1.0, %v1729_v41 }
  0xcc   : > { %v2035_v12 = vpop.permute.xlu0 %590  ;;  %v430_v47 = vadd.f32 %v1309_v37, %v1293_v44 }
  0xce   : > { %v455_v13 = vpop.permute.xlu1 %454 }
  0xcf   : > { %1596 = vset.pattern.permute.xlu1 %v1727_v4  ;;  %vm493_vm14 = vcmp.eq.s32.totalorder %v455_v13, %v1974_v38 }
  0xd0   : > { %484 = vperm.xlu1 %1596, %v213_v63   ;;  %v2044_v14 = vpop.permute.xlu0 %593  ;;  %v1324_v27 = vsel %vm493_vm14, 1.0, %v1729_v41  ;;  %vm608_vm14 = vcmp.eq.s32.totalorder %v2016_v62, %v1974_v38 }
  0xd1   : > { %v541_v39 = vadd.f32 %v1324_v27, %v429_v32  ;;  %v1343_v0 = vsel %vm608_vm14, 1.0, %v1729_v41 }
  0xd3   : > { %v2053_v4 = vpop.permute.xlu1 %236  ;;  %v653_v51 = vadd.f32 %v1340_v43, %v541_v39 }
  0xd4   : > { %1597 = vset.pattern.permute.xlu1 %v1728_v5  ;;  %v1338_v5 = vsel %vm603_vm11, 1.0, %v1729_v41  ;;  %vm271_vm12 = vcmp.eq.s32.totalorder %v2053_v4, %v1974_v38 }
  0xd5   : > { %596 = vperm.xlu1 %1597, %v213_v63   ;;  %v446_v21 = vpop.permute.xlu0 %445  ;;  %v651_v42 = vadd.f32 %v1338_v5, %v539_v24  ;;  %v1294_v63 = vsel %vm271_vm12, 1.0, %v1729_v41 }
  0xd6   : > { %vm490_vm1 = vcmp.eq.s32.totalorder %v446_v21, %v1974_v38 }
  0xd7   : > { %v1321_v25 = vsel %vm490_vm1, 1.0, %v1729_v41 }
  0xd8   : > { %v538_v28 = vadd.f32 %v1321_v25, %v426_v16  ;;  %v349_v29 = vpop.permute.xlu1 %348 }
  0xd9   : > { %599 = vperm.xlu1 %1597, %v1956_v34   ;;  %v452_v33 = vpop.permute.xlu0 %451  ;;  %vm383_vm9 = vcmp.eq.s32.totalorder %v349_v29, %v1974_v38 }
  0xda   : > { %vm492_vm5 = vcmp.eq.s32.totalorder %v452_v33, %v1974_v38  ;;  %v650_v36 = vadd.f32 %v1337_v19, %v538_v28  ;;  %v1310_v58 = vsel %vm383_vm9, 1.0, %v1729_v41 }
  0xdb   : > { %v1323_v40 = vsel %vm492_vm5, 1.0, %v1729_v41  ;;  %v431_v6 = vadd.f32 %v1310_v58, %v1294_v63  ;;  %vm609_vm5 = vcmp.eq.s32.totalorder %v2020_v2, %v1974_v38 }
  0xdc   : > { %v540_v34 = vadd.f32 %v1323_v40, %v428_v35  ;;  %1458 = vmatmul.mubr.f32.vlgmr.msra.gmra.mxu0 %v650_v36  ;;  %v1344_v29 = vsel %vm609_vm5, 1.0, %v1729_v41  ;;  %vm613_vm5 = vcmp.eq.s32.totalorder %v2035_v12, %v1974_v38 }
  0xdd   : > { %v240_v45 = vpop.permute.xlu1 %239  ;;  %1460 = vmatprep.mubr.f32.mxu0 %v651_v42  ;;  %v458_v46 = vpop.permute.xlu0 %457 }
  0xde   : > { %vm494_vm7 = vcmp.eq.s32.totalorder %v458_v46, %v1974_v38  ;;  %v652_v48 = vadd.f32 %v1339_v30, %v540_v34  ;;  %vm272_vm8 = vcmp.eq.s32.totalorder %v240_v45, %v1974_v38 }
  0xdf   : > { %v1325_v50 = vsel %vm494_vm7, 1.0, %v1729_v41  ;;  %v1295_v56 = vsel %vm272_vm8, 1.0, %v1729_v41  ;;  %vm610_vm7 = vcmp.eq.s32.totalorder %v2023_v7, %v1974_v38 }
  0xe0   : > { %v542_v52 = vadd.f32 %v1325_v50, %v430_v47  ;;  %1461 = vmatmul.mubr.f32.gmra.mxu0 %v652_v48  ;;  %v1345_v30 = vsel %vm610_vm7, 1.0, %v1729_v41  ;;  %v827_v48 = vld [vmem:[%s2377_s2 + $0x8] sm:$0xff]  ;;  %v1346_v50 = vsel %vm611_vm13, 1.0, %v1729_v41  ;;  %vm614_vm7 = vcmp.eq.s32.totalorder %v2044_v14, %v1974_v38 }
  0xe1   : > { %1463 = vmatprep.mubr.f32.mxu0 %v653_v51  ;;  %v464_v53 = vpop.permute.xlu0 %463  ;;  %1481 = vmatprep.subr.mxu1 %v827_v48 }
  0xe2   : > { %v352_v54 = vpop.permute.xlu1 %351  ;;  %v654_v55 = vadd.f32 %v1341_v49, %v542_v52  ;;  %vm496_vm11 = vcmp.eq.s32.totalorder %v464_v53, %v1974_v38  ;;  %1482 = vmatpush3.msra.mxu1 %v827_v48 }
  0xe3   : > { %vm384_vm10 = vcmp.eq.s32.totalorder %v352_v54, %v1974_v38  ;;  %v1327_v61 = vsel %vm496_vm11, 1.0, %v1729_v41  ;;  %1483 = vmatprep.subr.mxu1 %v826_v9 }
  0xe4   : > { %v1311_v57 = vsel %vm384_vm10, 1.0, %v1729_v41  ;;  %1464 = vmatmul.mubr.f32.gmra.mxu0 %v654_v55  ;;  %1484 = vmatpush3.msra.mxu1 %v826_v9 }
  0xe5   : > { %v432_v59 = vadd.f32 %v1311_v57, %v1295_v56  ;;  %v470_v17 = vpop.permute.xlu0 %469 }
  0xe6   : > { %vm498_vm3 = vcmp.eq.s32.totalorder %v470_v17, %v1974_v38 }
  0xe7   : > { %v461_v1 = vpop.permute.xlu1 %460  ;;  %v544_v11 = vadd.f32 %v1327_v61, %v432_v59  ;;  %v1329_v5 = vsel %vm498_vm3, 1.0, %v1729_v41 }
  0xe8   : > { %vm495_vm15 = vcmp.eq.s32.totalorder %v461_v1, %v1974_v38 }
  0xe9   : > { %v1326_v13 = vsel %vm495_vm15, 1.0, %v1729_v41  ;;  %v656_v16 = vadd.f32 %v1343_v0, %v544_v11  ;;  %v476_v36 = vpop.permute.xlu0 %475  ;;  %vm612_vm15 = vcmp.eq.s32.totalorder %v2031_v10, %v1974_v38 }
  0xea   : > { %v543_v3 = vadd.f32 %v1326_v13, %v431_v6  ;;  %vm500_vm11 = vcmp.eq.s32.totalorder %v476_v36, %v1974_v38  ;;  %v1347_v51 = vsel %vm612_vm15, 1.0, %v1729_v41 }
  0xeb   : > { %v1331_v43 = vsel %vm500_vm11, 1.0, %v1729_v41 }
  0xec   : > { %v243_v60 = vpop.permute.xlu1 %242  ;;  %v655_v15 = vadd.f32 %v1342_v8, %v543_v3 }
  0xed   : > { %vm273_vm4 = vcmp.eq.s32.totalorder %v243_v60, %v1974_v38  ;;  %v482_v56 = vpop.permute.xlu0 %481  ;;  %v1348_v60 = vsel %vm613_vm5, 1.0, %v1729_v41 }
  0xee   : > { %1466 = vmatprep.mubr.f32.mxu0 %v655_v15  ;;  %v1296_v23 = vsel %vm273_vm4, 1.0, %v1729_v41  ;;  %vm502_vm3 = vcmp.eq.s32.totalorder %v482_v56, %v1974_v38  ;;  %v1349_v15 = vsel %vm614_vm7, 1.0, %v1729_v41 }
  0xef   : > { %1467 = vmatmul.mubr.f32.gmra.mxu0 %v656_v16  ;;  %v1333_v1 = vsel %vm502_vm3, 1.0, %v1729_v41 }
  0xf1   : > { %v355_v62 = vpop.permute.xlu1 %354 }
  0xf2   : > { %vm385_vm1 = vcmp.eq.s32.totalorder %v355_v62, %v1974_v38 }
  0xf3   : > { %v1312_v21 = vsel %vm385_vm1, 1.0, %v1729_v41 }
  0xf4   : > { %v433_v25 = vadd.f32 %v1312_v21, %v1296_v23 }
  0xf6   : > { %v246_v4 = vpop.permute.xlu1 %245 }
  0xf7   : > { %vm274_vm0 = vcmp.eq.s32.totalorder %v246_v4, %v1974_v38 }
  0xf8   : > { %v1297_v19 = vsel %vm274_vm0, 1.0, %v1729_v41 }
  0xfb   : > { %v358_v18 = vpop.permute.xlu1 %357 }
  0xfc   : > { %vm386_vm2 = vcmp.eq.s32.totalorder %v358_v18, %v1974_v38 }
  0xfd   : > { %v1313_v20 = vsel %vm386_vm2, 1.0, %v1729_v41 }
  0xfe   : > { %v434_v22 = vadd.f32 %v1313_v20, %v1297_v19  ;;  %v488_v20 = vpop.permute.xlu0 %487 }
  0xff   : > { %vm504_vm13 = vcmp.eq.s32.totalorder %v488_v20, %v1974_v38 }
 0x100   : > { %v467_v24 = vpop.permute.xlu1 %466  ;;  %v546_v26 = vadd.f32 %v1329_v5, %v434_v22 }
 0x101   : > { %vm497_vm6 = vcmp.eq.s32.totalorder %v467_v24, %v1974_v38 }
 0x102   : > { %v1328_v27 = vsel %vm497_vm6, 1.0, %v1729_v41  ;;  %v658_v33 = vadd.f32 %v1345_v30, %v546_v26  ;;  %v1335_v30 = vsel %vm504_vm13, 1.0, %v1729_v41 }
 0x103   : > { %v545_v28 = vadd.f32 %v1328_v27, %v433_v25 }
 0x105   : > { %v249_v31 = vpop.permute.xlu1 %248  ;;  %v657_v32 = vadd.f32 %v1344_v29, %v545_v28 }
 0x106   : > { %vm275_vm12 = vcmp.eq.s32.totalorder %v249_v31, %v1974_v38 }
 0x107   : > { %1469 = vmatprep.mubr.f32.mxu0 %v657_v32  ;;  %v1298_v34 = vsel %vm275_vm12, 1.0, %v1729_v41 }
 0x108   : > { %1470 = vmatmul.mubr.f32.gmra.mxu0 %v658_v33 }
 0x10a   : > { %v361_v2 = vpop.permute.xlu1 %360 }
 0x10b   : > { %vm387_vm9 = vcmp.eq.s32.totalorder %v361_v2, %v1974_v38 }
 0x10c   : > { %v1314_v40 = vsel %vm387_vm9, 1.0, %v1729_v41 }
 0x10d   : > { %v435_v45 = vadd.f32 %v1314_v40, %v1298_v34 }
 0x10f   : > { %v252_v35 = vpop.permute.xlu1 %251 }
 0x110   : > { %vm276_vm8 = vcmp.eq.s32.totalorder %v252_v35, %v1974_v38 }
 0x111   : > { %v1299_v37 = vsel %vm276_vm8, 1.0, %v1729_v41 }
 0x114   : > { %v364_v7 = vpop.permute.xlu1 %363 }
 0x115   : > { %vm388_vm10 = vcmp.eq.s32.totalorder %v364_v7, %v1974_v38 }
 0x116   : > { %v1315_v39 = vsel %vm388_vm10, 1.0, %v1729_v41 }
 0x117   : > { %v436_v42 = vadd.f32 %v1315_v39, %v1299_v37 }
 0x119   : > { %v473_v44 = vpop.permute.xlu1 %472  ;;  %v548_v46 = vadd.f32 %v1331_v43, %v436_v42 }
 0x11a   : > { %vm499_vm14 = vcmp.eq.s32.totalorder %v473_v44, %v1974_v38 }
 0x11b   : > { %v1330_v47 = vsel %vm499_vm14, 1.0, %v1729_v41  ;;  %v660_v53 = vadd.f32 %v1347_v51, %v548_v46 }
 0x11c   : > { %v547_v49 = vadd.f32 %v1330_v47, %v435_v45 }
 0x11e   : > { %v255_v52 = vpop.permute.xlu1 %254  ;;  %v659_v10 = vadd.f32 %v1346_v50, %v547_v49  ;;  %v1352_v49 = vld [vmem:[%s2378_s3] ss:$0 sm:$0xff] }
 0x11f   : > { %vm277_vm4 = vcmp.eq.s32.totalorder %v255_v52, %v1974_v38 }
 0x120   : > { %1472 = vmatprep.mubr.f32.mxu0 %v659_v10  ;;  %v1300_v6 = vsel %vm277_vm4, 1.0, %v1729_v41 }
 0x121   : > { %1473 = vmatmul.mubr.f32.gmra.mxu0 %v660_v53 }
 0x123   : > { %v367_v54 = vpop.permute.xlu1 %366 }
 0x124   : > { %vm389_vm1 = vcmp.eq.s32.totalorder %v367_v54, %v1974_v38 }
 0x125   : > { %v1316_v61 = vsel %vm389_vm1, 1.0, %v1729_v41 }
 0x126   : > { %v437_v11 = vadd.f32 %v1316_v61, %v1300_v6 }
 0x128   : > { %v258_v55 = vpop.permute.xlu1 %257 }
 0x129   : > { %vm278_vm0 = vcmp.eq.s32.totalorder %v258_v55, %v1974_v38 }
 0x12a   : > { %v1301_v58 = vsel %vm278_vm0, 1.0, %v1729_v41  ;;  %vm835_vm0 = vcmask 130048  }
 0x12d   : > { %v370_v57 = vpop.permute.xlu1 %369 }
 0x12e   : > { %vm390_vm2 = vcmp.eq.s32.totalorder %v370_v57, %v1974_v38 }
 0x12f   : > { %v1317_v59 = vsel %vm390_vm2, 1.0, %v1729_v41 }
 0x130   : > { %v438_v63 = vadd.f32 %v1317_v59, %v1301_v58 }
 0x132   : > { %v479_v8 = vpop.permute.xlu1 %478  ;;  %v550_v13 = vadd.f32 %v1333_v1, %v438_v63 }
 0x133   : > { %vm501_vm6 = vcmp.eq.s32.totalorder %v479_v8, %v1974_v38 }
 0x134   : > { %v1332_v0 = vsel %vm501_vm6, 1.0, %v1729_v41  ;;  %v662_v4 = vadd.f32 %v1349_v15, %v550_v13 }
 0x135   : > { %v549_v3 = vadd.f32 %v1332_v0, %v437_v11 }
 0x137   : > { %v261_v16 = vpop.permute.xlu1 %260  ;;  %v661_v62 = vadd.f32 %v1348_v60, %v549_v3 }
 0x138   : > { %vm279_vm9 = vcmp.eq.s32.totalorder %v261_v16, %v1974_v38 }
 0x139   : > { %1475 = vmatprep.mubr.f32.mxu0 %v661_v62  ;;  %v1302_v21 = vsel %vm279_vm9, 1.0, %v1729_v41 }
 0x13a   : > { %1476 = vmatmul.mubr.f32.gmra.mxu0 %v662_v4 }
 0x13c   : > { %v373_v12 = vpop.permute.xlu1 %372 }
 0x13d   : > { %vm391_vm8 = vcmp.eq.s32.totalorder %v373_v12, %v1974_v38 }
 0x13e   : > { %v1318_v19 = vsel %vm391_vm8, 1.0, %v1729_v41 }
 0x13f   : > { %v439_v23 = vadd.f32 %v1318_v19, %v1302_v21 }
 0x141   : > { %v264_v17 = vpop.permute.xlu1 %263 }
 0x142   : > { %vm280_vm12 = vcmp.eq.s32.totalorder %v264_v17, %v1974_v38 }
 0x143   : > { %v1303_v24 = vsel %vm280_vm12, 1.0, %v1729_v41 }
 0x146   : > { %v376_v18 = vpop.permute.xlu1 %375 }
 0x147   : > { %vm392_vm10 = vcmp.eq.s32.totalorder %v376_v18, %v1974_v38 }
 0x148   : > { %v1319_v22 = vsel %vm392_vm10, 1.0, %v1729_v41 }
 0x149   : > { %v440_v26 = vadd.f32 %v1319_v22, %v1303_v24 }
 0x14b   : > { %v485_v14 = vpop.permute.xlu1 %484  ;;  %v552_v32 = vadd.f32 %v1335_v30, %v440_v26 }
 0x14c   : > { %vm503_vm11 = vcmp.eq.s32.totalorder %v485_v14, %v1974_v38 }
 0x14d   : > { %v1334_v5 = vsel %vm503_vm11, 1.0, %v1729_v41 }
 0x14e   : > { %v551_v27 = vadd.f32 %v1334_v5, %v439_v23 }
 0x150   : > { %v597_v25 = vpop.permute.xlu1 %596 }
 0x151   : > { %vm615_vm14 = vcmp.eq.s32.totalorder %v597_v25, %v1974_v38 }
 0x152   : > { %v1350_v28 = vsel %vm615_vm14, 1.0, %v1729_v41 }
 0x153   : > { %v663_v29 = vadd.f32 %v1350_v28, %v551_v27 }
 0x154   : > { %v600_v31 = vpop.permute.xlu1 %599 }
 0x155   : > { %vm616_vm15 = vcmp.eq.s32.totalorder %v600_v31, %v1974_v38  ;;  %1478 = vmatprep.mubr.f32.mxu0 %v663_v29 }
 0x156   : > { %v1351_v33 = vsel %vm616_vm15, 1.0, %v1729_v41 }
 0x157   : > { %v664_v2 = vadd.f32 %v1351_v33, %v552_v32 }
 0x159   : > { %1479 = vmatmul.mubr.f32.gmra.mxu0 %v664_v2 }
 0x19c   : > { %v1459_v35 = vpop.f32.mrf.mxu0 }
 0x19e   : > { %v747_v36 = vpop.f32.mrf.mxu0 }
 0x19f   : > { %1485 = vmatprep.mubr.msk.f32.mxu1 %vm835_vm0, %v747_v36 }
 0x1a0   : > { %v1462_v7 = vpop.f32.mrf.mxu0  ;;  %1486 = vmatmul.mubr.msk.f32.vlgmr.msra.gmra.mxu1 %vm835_vm0, %v1459_v35 }
 0x1a2   : > { %v757_v37 = vpop.f32.mrf.mxu0 }
 0x1a3   : > { %1488 = vmatprep.mubr.msk.f32.mxu1 %vm835_vm0, %v757_v37 }
 0x1a4   : > { %v1465_v39 = vpop.f32.mrf.mxu0  ;;  %1489 = vmatmul.mubr.msk.f32.gmra.mxu1 %vm835_vm0, %v1462_v7 }
 0x1a6   : > { %v767_v38 = vpop.f32.mrf.mxu0 }
 0x1a7   : > { %1491 = vmatprep.mubr.msk.f32.mxu1 %vm835_vm0, %v767_v38 }
 0x1a8   : > { %1492 = vmatmul.mubr.msk.f32.gmra.mxu1 %vm835_vm0, %v1465_v39 }
 0x1af   : > { %v1468_v41 = vpop.f32.mrf.mxu0 }
 0x1b1   : > { %v777_v40 = vpop.f32.mrf.mxu0 }
 0x1b2   : > { %1494 = vmatprep.mubr.msk.f32.mxu1 %vm835_vm0, %v777_v40 }
 0x1b3   : > { %1495 = vmatmul.mubr.msk.f32.gmra.mxu1 %vm835_vm0, %v1468_v41 }
 0x1c8   : > { %v1471_v42 = vpop.f32.mrf.mxu0 }
 0x1ca   : > { %v787_v43 = vpop.f32.mrf.mxu0 }
 0x1cb   : > { %1497 = vmatprep.mubr.msk.f32.mxu1 %vm835_vm0, %v787_v43 }
 0x1cc   : > { %1498 = vmatmul.mubr.msk.f32.gmra.mxu1 %vm835_vm0, %v1471_v42 }
 0x1e1   : > { %v1474_v34 = vpop.f32.mrf.mxu0 }
 0x1e3   : > { %v797_v44 = vpop.f32.mrf.mxu0 }
 0x1e4   : > { %1500 = vmatprep.mubr.msk.f32.mxu1 %vm835_vm0, %v797_v44 }
 0x1e5   : > { %1501 = vmatmul.mubr.msk.f32.gmra.mxu1 %vm835_vm0, %v1474_v34 }
 0x1fa   : > { %v1477_v45 = vpop.f32.mrf.mxu0 }
 0x1fc   : > { %v807_v46 = vpop.f32.mrf.mxu0 }
 0x1fd   : > { %1503 = vmatprep.mubr.msk.f32.mxu1 %vm835_vm0, %v807_v46 }
 0x1fe   : > { %1504 = vmatmul.mubr.msk.f32.gmra.mxu1 %vm835_vm0, %v1477_v45 }
 0x219   : > { %v1480_v47 = vpop.f32.mrf.mxu0 }
 0x21b   : > { %v817_v48 = vpop.f32.mrf.mxu0 }
 0x21c   : > { %1506 = vmatprep.mubr.msk.f32.mxu1 %vm835_vm0, %v817_v48 }
 0x21d   : > { %1507 = vmatmul.mubr.msk.f32.gmra.mxu1 %vm835_vm0, %v1480_v47 }
 0x260   : > { %v1487_v50 = vpop.f32.mrf.mxu1 }
 0x261   : > { %v956_v9 = vadd.f32 %v1487_v50, %v1352_v49 }
 0x262   : > { %v950_v51 = vpop.f32.mrf.mxu1 }
 0x263   : > { %v951_v52 = vadd.f32 %v1352_v49, %v950_v51  ;;  %1031 = vmax.xlane.f32.xlu1 %v956_v9 }
 0x264   : > { %v1490_v10 = vpop.f32.mrf.mxu1 }
 0x265   : > { %1029 = vmax.xlane.f32.xlu0 %v951_v52  ;;  %v966_v54 = vadd.f32 %v1490_v10, %v1352_v49 }
 0x266   : > { %v960_v53 = vpop.f32.mrf.mxu1 }
 0x267   : > { %v961_v57 = vadd.f32 %v1352_v49, %v960_v53 }
 0x268   : > { %v1493_v55 = vpop.f32.mrf.mxu1 }
 0x269   : > { %1035 = vmax.xlane.f32.xlu0 %v966_v54  ;;  %v976_v59 = vadd.f32 %v1493_v55, %v1352_v49 }
 0x26a   : > { %v970_v56 = vpop.f32.mrf.mxu1 }
 0x26b   : > { %v971_v58 = vadd.f32 %v1352_v49, %v970_v56 }
 0x26d   : > { %1033 = vmax.xlane.f32.xlu0 %v961_v57  ;;  %1037 = vmax.xlane.f32.xlu1 %v971_v58 }
 0x271   : > { %1039 = vmax.xlane.f32.xlu0 %v976_v59 }
 0x273   : > { %v1496_v61 = vpop.f32.mrf.mxu1 }
 0x274   : > { %v986_v63 = vadd.f32 %v1496_v61, %v1352_v49 }
 0x275   : > { %v980_v1 = vpop.f32.mrf.mxu1 }
 0x276   : > { %v981_v6 = vadd.f32 %v1352_v49, %v980_v1  ;;  %1043 = vmax.xlane.f32.xlu0 %v986_v63 }
 0x278   : > { %1041 = vmax.xlane.f32.xlu1 %v981_v6 }
 0x28c   : > { %v1499_v8 = vpop.f32.mrf.mxu1 }
 0x28d   : > { %v2207_v11 = vadd.f32 %v1499_v8, %v1352_v49 }
 0x28e   : > { %v990_v13 = vpop.f32.mrf.mxu1 }
 0x28f   : > { %v2209_v0 = vadd.f32 %v1352_v49, %v990_v13  ;;  %1047 = vmax.xlane.f32.xlu0 %v2207_v11 }
 0x291   : > { %1045 = vmax.xlane.f32.xlu1 %v2209_v0 }
 0x2a5   : > { %v1502_v3 = vpop.f32.mrf.mxu1 }
 0x2a6   : > { %v2213_v60 = vadd.f32 %v1502_v3, %v1352_v49 }
 0x2a7   : > { %v1000_v15 = vpop.f32.mrf.mxu1 }
 0x2a8   : > { %v2215_v16 = vadd.f32 %v1352_v49, %v1000_v15  ;;  %1051 = vmax.xlane.f32.xlu0 %v2213_v60 }
 0x2aa   : > { %1049 = vmax.xlane.f32.xlu1 %v2215_v16 }
 0x2be   : > { %v1505_v62 = vpop.f32.mrf.mxu1 }
 0x2bf   : > { %v2219_v4 = vadd.f32 %v1505_v62, %v1352_v49 }
 0x2c0   : > { %v1010_v12 = vpop.f32.mrf.mxu1 }
 0x2c1   : > { %v2221_v17 = vadd.f32 %v1352_v49, %v1010_v12  ;;  %1055 = vmax.xlane.f32.xlu0 %v2219_v4 }
 0x2c3   : > { %1053 = vmax.xlane.f32.xlu1 %v2221_v17 }
 0x2dd   : > { %v1508_v18 = vpop.f32.mrf.mxu1 }
 0x2de   : > { %v2225_v14 = vadd.f32 %v1508_v18, %v1352_v49 }
 0x2df   : > { %v1020_v19 = vpop.f32.mrf.mxu1 }
 0x2e0   : > { %v2227_v20 = vadd.f32 %v1352_v49, %v1020_v19  ;;  %1059 = vmax.xlane.f32.xlu0 %v2225_v14 }
 0x2e2   : > { %1057 = vmax.xlane.f32.xlu1 %v2227_v20 }
 0x2ec   : > { %v1032_v21 = vpop.xlane.xlu1 %1031 }
 0x2ed   : > { %v2231_v22 = vsub.f32 %v956_v9, %v1032_v21 }
 0x2ee   : > { %v1030_v5 = vpop.xlane.xlu0 %1029 }
 0x2ef   : > { %v1079_v23 = vmul.f32 1.442695, %v2231_v22  ;;  %v2234_v24 = vsub.f32 %v951_v52, %v1030_v5 }
 0x2f1   : > { %1599 = vpow2.f32 %v1079_v23  ;;  %v1077_v25 = vmul.f32 1.442695, %v2234_v24 }
 0x2f2   : > { %v1036_v26 = vpop.xlane.xlu0 %1035 }
 0x2f3   : > { %1601 = vpow2.f32 %v1077_v25  ;;  %v2237_v27 = vsub.f32 %v966_v54, %v1036_v26 }
 0x2f5   : > { %v1083_v28 = vmul.f32 1.442695, %v2237_v27 }
 0x2f6   : > { %v1038_v29 = vpop.xlane.xlu1 %1037  ;;  %v1034_v30 = vpop.xlane.xlu0 %1033 }
 0x2f7   : > { %1603 = vpow2.f32 %v1083_v28  ;;  %v2240_v31 = vsub.f32 %v961_v57, %v1034_v30  ;;  %v2242_v32 = vsub.f32 %v971_v58, %v1038_v29 }
 0x2f9   : > { %v1081_v33 = vmul.f32 1.442695, %v2240_v31  ;;  %v1085_v36 = vmul.f32 1.442695, %v2242_v32 }
 0x2fa   : > { %v1040_v2 = vpop.xlane.xlu0 %1039 }
 0x2fb   : > { %v2245_v35 = vsub.f32 %v976_v59, %v1040_v2  ;;  %1605 = vpow2.f32 %v1081_v33 }
 0x2fd   : > { %v1087_v7 = vmul.f32 1.442695, %v2245_v35 }
 0x2fe   : > { %v1600_v37 = vpop.eup %1599 }
 0x2ff   : > { %1607 = vpow2.f32 %v1087_v7  ;;  %1111 = vadd.xlane.f32.xlu0 %v1600_v37  ;;  %v1044_v39 = vpop.xlane.xlu0 %1043 }
 0x300   : > { %v1602_v38 = vpop.eup %1601  ;;  %1609 = vpow2.f32 %v1085_v36  ;;  %v2249_v41 = vsub.f32 %v986_v63, %v1044_v39 }
 0x301   : > { %v1042_v40 = vpop.xlane.xlu1 %1041  ;;  %1109 = vadd.xlane.f32.xlu1 %v1602_v38 }
 0x302   : > { %v1091_v42 = vmul.f32 1.442695, %v2249_v41  ;;  %v2252_v43 = vsub.f32 %v981_v6, %v1042_v40 }
 0x304   : > { %v1604_v34 = vpop.eup %1603  ;;  %1611 = vpow2.f32 %v1091_v42  ;;  %v1089_v44 = vmul.f32 1.442695, %v2252_v43 }
 0x305   : > { %1115 = vadd.xlane.f32.xlu0 %v1604_v34 }
 0x306   : > { %1613 = vpow2.f32 %v1089_v44 }
 0x308   : > { %v1606_v45 = vpop.eup %1605 }
 0x309   : > { %1113 = vadd.xlane.f32.xlu1 %v1606_v45 }
 0x30c   : > { %v1608_v46 = vpop.eup %1607 }
 0x30d   : > { %v1610_v47 = vpop.eup %1609  ;;  %1119 = vadd.xlane.f32.xlu0 %v1608_v46 }
 0x30e   : > { %1117 = vadd.xlane.f32.xlu1 %v1610_v47 }
 0x311   : > { %v1612_v48 = vpop.eup %1611 }
 0x312   : > { %1123 = vadd.xlane.f32.xlu0 %v1612_v48 }
 0x313   : > { %v1614_v49 = vpop.eup %1613 }
 0x314   : > { %1121 = vadd.xlane.f32.xlu1 %v1614_v49 }
 0x318   : > { %v1048_v50 = vpop.xlane.xlu0 %1047 }
 0x319   : > { %v2256_v9 = vsub.f32 %v2207_v11, %v1048_v50 }
 0x31a   : > { %v1046_v51 = vpop.xlane.xlu1 %1045 }
 0x31b   : > { %v1095_v52 = vmul.f32 1.442695, %v2256_v9  ;;  %v2260_v10 = vsub.f32 %v2209_v0, %v1046_v51 }
 0x31d   : > { %1615 = vpow2.f32 %v1095_v52  ;;  %v1093_v53 = vmul.f32 1.442695, %v2260_v10 }
 0x31f   : > { %1617 = vpow2.f32 %v1093_v53 }
 0x32a   : > { %v1616_v54 = vpop.eup %1615 }
 0x32b   : > { %1127 = vadd.xlane.f32.xlu0 %v1616_v54 }
 0x32c   : > { %v1618_v55 = vpop.eup %1617 }
 0x32d   : > { %1125 = vadd.xlane.f32.xlu1 %v1618_v55 }
 0x331   : > { %v1052_v56 = vpop.xlane.xlu0 %1051 }
 0x332   : > { %v2264_v57 = vsub.f32 %v2213_v60, %v1052_v56 }
 0x333   : > { %v1050_v58 = vpop.xlane.xlu1 %1049 }
 0x334   : > { %v1099_v59 = vmul.f32 1.442695, %v2264_v57  ;;  %v2268_v61 = vsub.f32 %v2215_v16, %v1050_v58 }
 0x336   : > { %1619 = vpow2.f32 %v1099_v59  ;;  %v1097_v63 = vmul.f32 1.442695, %v2268_v61 }
 0x338   : > { %1621 = vpow2.f32 %v1097_v63 }
 0x343   : > { %v1620_v1 = vpop.eup %1619 }
 0x344   : > { %1131 = vadd.xlane.f32.xlu0 %v1620_v1 }
 0x345   : > { %v1622_v6 = vpop.eup %1621 }
 0x346   : > { %1129 = vadd.xlane.f32.xlu1 %v1622_v6 }
 0x34a   : > { %v1056_v8 = vpop.xlane.xlu0 %1055 }
 0x34b   : > { %v2272_v11 = vsub.f32 %v2219_v4, %v1056_v8 }
 0x34c   : > { %v1054_v13 = vpop.xlane.xlu1 %1053 }
 0x34d   : > { %v1103_v0 = vmul.f32 1.442695, %v2272_v11  ;;  %v2276_v3 = vsub.f32 %v2221_v17, %v1054_v13 }
 0x34f   : > { %1623 = vpow2.f32 %v1103_v0  ;;  %v1101_v60 = vmul.f32 1.442695, %v2276_v3 }
 0x351   : > { %1625 = vpow2.f32 %v1101_v60 }
 0x35c   : > { %v1624_v15 = vpop.eup %1623 }
 0x35d   : > { %1135 = vadd.xlane.f32.xlu0 %v1624_v15 }
 0x35e   : > { %v1626_v16 = vpop.eup %1625 }
 0x35f   : > { %1133 = vadd.xlane.f32.xlu1 %v1626_v16 }
 0x369   : > { %v1060_v62 = vpop.xlane.xlu0 %1059 }
 0x36a   : > { %v2280_v12 = vsub.f32 %v2225_v14, %v1060_v62 }
 0x36b   : > { %v1058_v4 = vpop.xlane.xlu1 %1057 }
 0x36c   : > { %v1107_v18 = vmul.f32 1.442695, %v2280_v12  ;;  %v2284_v19 = vsub.f32 %v2227_v20, %v1058_v4 }
 0x36e   : > { %1627 = vpow2.f32 %v1107_v18  ;;  %v1105_v17 = vmul.f32 1.442695, %v2284_v19 }
 0x370   : > { %1629 = vpow2.f32 %v1105_v17 }
 0x37b   : > { %v1628_v21 = vpop.eup %1627 }
 0x37c   : > { %1139 = vadd.xlane.f32.xlu0 %v1628_v21 }
 0x37d   : > { %v1630_v5 = vpop.eup %1629 }
 0x37e   : > { %1137 = vadd.xlane.f32.xlu1 %v1630_v5 }
 0x388   : > { %v1112_v23 = vpop.xlane.xlu0 %1111 }
 0x389   : > { %1631 = vlog2.f32 %v1112_v23 }
 0x38a   : > { %v1110_v14 = vpop.xlane.xlu1 %1109 }
 0x38b   : > { %1633 = vlog2.f32 %v1110_v14 }
 0x38e   : > { %v1116_v25 = vpop.xlane.xlu0 %1115 }
 0x38f   : > { %1635 = vlog2.f32 %v1116_v25 }
 0x392   : > { %v1114_v26 = vpop.xlane.xlu1 %1113 }
 0x393   : > { %1637 = vlog2.f32 %v1114_v26 }
 0x396   : > { %v1632_v20 = vpop.eup %1631  ;;  %v1120_v28 = vpop.xlane.xlu0 %1119 }
 0x397   : > { %v1144_v29 = vmul.f32 0.6931472, %v1632_v20  ;;  %v1118_v30 = vpop.xlane.xlu1 %1117  ;;  %1639 = vlog2.f32 %v1120_v28 }
 0x398   : > { %v1634_v33 = vpop.eup %1633  ;;  %1641 = vlog2.f32 %v1118_v30 }
 0x399   : > { %v1174_v2 = vsub.f32 %v2231_v22, %v1144_v29  ;;  %v1142_v36 = vmul.f32 0.6931472, %v1634_v33 }
 0x39b   : > { %1190 = vst [vmem:[%s2291_s13 + $0x8] sm:$0xff] %v1174_v2  ;;  %v1173_v7 = vsub.f32 %v2234_v24, %v1142_v36  ;;  %v1124_v37 = vpop.xlane.xlu0 %1123 }
 0x39c   : > { %v1636_v39 = vpop.eup %1635  ;;  %1643 = vlog2.f32 %v1124_v37 }
 0x39d   : > { %1189 = vst [vmem:[%s2291_s13] sm:$0xff] %v1173_v7  ;;  %v1148_v38 = vmul.f32 0.6931472, %v1636_v39  ;;  %v1122_v40 = vpop.xlane.xlu1 %1121 }
 0x39e   : > { %1645 = vlog2.f32 %v1122_v40 }
 0x39f   : > { %v1176_v22 = vsub.f32 %v2237_v27, %v1148_v38 }
 0x3a0   : > { %v1638_v42 = vpop.eup %1637 }
 0x3a1   : > { %1192 = vst [vmem:[%s2291_s13 + $0x18] sm:$0xff] %v1176_v22  ;;  %v1146_v34 = vmul.f32 0.6931472, %v1638_v42 }
 0x3a3   : > { %v1175_v45 = vsub.f32 %v2240_v31, %v1146_v34 }
 0x3a4   : > { %v1640_v44 = vpop.eup %1639 }
 0x3a5   : > { %v1642_v24 = vpop.eup %1641  ;;  %v1152_v46 = vmul.f32 0.6931472, %v1640_v44  ;;  %1191 = vst [vmem:[%s2291_s13 + $0x10] sm:$0xff] %v1175_v45 }
 0x3a6   : > { %v1150_v47 = vmul.f32 0.6931472, %v1642_v24 }
 0x3a7   : > { %v1178_v48 = vsub.f32 %v2245_v35, %v1152_v46 }
 0x3a8   : > { %v1177_v49 = vsub.f32 %v2242_v32, %v1150_v47 }
 0x3a9   : > { %v1644_v50 = vpop.eup %1643  ;;  %1194 = vst [vmem:[%s2291_s13 + $0x28] sm:$0xff] %v1178_v48 }
 0x3aa   : > { %1193 = vst [vmem:[%s2291_s13 + $0x20] sm:$0xff] %v1177_v49  ;;  %v1156_v27 = vmul.f32 0.6931472, %v1644_v50 }
 0x3ab   : > { %v1646_v51 = vpop.eup %1645 }
 0x3ac   : > { %v1180_v52 = vsub.f32 %v2249_v41, %v1156_v27  ;;  %v1154_v53 = vmul.f32 0.6931472, %v1646_v51 }
 0x3ae   : > { %1196 = vst [vmem:[%s2291_s13 + $0x38] sm:$0xff] %v1180_v52  ;;  %v1179_v31 = vsub.f32 %v2252_v43, %v1154_v53 }
 0x3b0   : > { %1195 = vst [vmem:[%s2291_s13 + $0x30] sm:$0xff] %v1179_v31 }
 0x3b4   : > { %v1128_v54 = vpop.xlane.xlu0 %1127 }
 0x3b5   : > { %1647 = vlog2.f32 %v1128_v54 }
 0x3b6   : > { %v1126_v55 = vpop.xlane.xlu1 %1125 }
 0x3b7   : > { %1649 = vlog2.f32 %v1126_v55 }
 0x3c2   : > { %v1648_v35 = vpop.eup %1647 }
 0x3c3   : > { %v1160_v32 = vmul.f32 0.6931472, %v1648_v35 }
 0x3c4   : > { %v1650_v56 = vpop.eup %1649 }
 0x3c5   : > { %v1182_v58 = vsub.f32 %v2256_v9, %v1160_v32  ;;  %v1158_v59 = vmul.f32 0.6931472, %v1650_v56 }
 0x3c7   : > { %1198 = vst [vmem:[%s2291_s13 + $0x48] sm:$0xff] %v1182_v58  ;;  %v1181_v41 = vsub.f32 %v2260_v10, %v1158_v59 }
 0x3c9   : > { %1197 = vst [vmem:[%s2291_s13 + $0x40] sm:$0xff] %v1181_v41 }
 0x3cd   : > { %v1132_v63 = vpop.xlane.xlu0 %1131 }
 0x3ce   : > { %1651 = vlog2.f32 %v1132_v63 }
 0x3cf   : > { %v1130_v43 = vpop.xlane.xlu1 %1129 }
 0x3d0   : > { %1653 = vlog2.f32 %v1130_v43 }
 0x3db   : > { %v1652_v1 = vpop.eup %1651 }
 0x3dc   : > { %v1164_v6 = vmul.f32 0.6931472, %v1652_v1 }
 0x3dd   : > { %v1654_v8 = vpop.eup %1653 }
 0x3de   : > { %v1184_v13 = vsub.f32 %v2264_v57, %v1164_v6  ;;  %v1162_v0 = vmul.f32 0.6931472, %v1654_v8 }
 0x3e0   : > { %1200 = vst [vmem:[%s2291_s13 + $0x58] sm:$0xff] %v1184_v13  ;;  %v1183_v9 = vsub.f32 %v2268_v61, %v1162_v0 }
 0x3e2   : > { %1199 = vst [vmem:[%s2291_s13 + $0x50] sm:$0xff] %v1183_v9 }
 0x3e6   : > { %v1136_v60 = vpop.xlane.xlu0 %1135 }
 0x3e7   : > { %1655 = vlog2.f32 %v1136_v60 }
 0x3e8   : > { %v1134_v10 = vpop.xlane.xlu1 %1133 }
 0x3e9   : > { %1657 = vlog2.f32 %v1134_v10 }
 0x3f4   : > { %v1656_v15 = vpop.eup %1655 }
 0x3f5   : > { %v1168_v16 = vmul.f32 0.6931472, %v1656_v15 }
 0x3f6   : > { %v1658_v62 = vpop.eup %1657 }
 0x3f7   : > { %v1186_v4 = vsub.f32 %v2272_v11, %v1168_v16  ;;  %v1166_v18 = vmul.f32 0.6931472, %v1658_v62 }
 0x3f9   : > { %1202 = vst [vmem:[%s2291_s13 + $0x68] sm:$0xff] %v1186_v4  ;;  %v1185_v57 = vsub.f32 %v2276_v3, %v1166_v18 }
 0x3fb   : > { %1201 = vst [vmem:[%s2291_s13 + $0x60] sm:$0xff] %v1185_v57 }
 0x405   : > { %v1140_v61 = vpop.xlane.xlu0 %1139 }
 0x406   : > { %1659 = vlog2.f32 %v1140_v61 }
 0x407   : > { %v1138_v17 = vpop.xlane.xlu1 %1137 }
 0x408   : > { %1661 = vlog2.f32 %v1138_v17 }
 0x413   : > { %v1660_v21 = vpop.eup %1659 }
 0x414   : > { %v1172_v5 = vmul.f32 0.6931472, %v1660_v21 }
 0x415   : > { %v1662_v23 = vpop.eup %1661 }
 0x416   : > { %v1188_v11 = vsub.f32 %v2280_v12, %v1172_v5  ;;  %v1170_v14 = vmul.f32 0.6931472, %v1662_v23 }
 0x418   : > { %1204 = vst [vmem:[%s2291_s13 + $0x78] sm:$0xff] %v1188_v11  ;;  %v1187_v3 = vsub.f32 %v2284_v19, %v1170_v14 }
 0x41a   : > { %1203 = vst [vmem:[%s2291_s13 + $0x70] sm:$0xff] %v1187_v3 }
 0x41b   : > { %1676 = shalt.err (!%p1673_p3)
}
 0x41c   : > { %s1677_s6 = scalar_lea.hbm %s2326_s27, 2048  ;;  %s1681_s9 = scalar_lea.hbm %s2379_s4, 4096 }
 0x41d   : > { %p1678_p4 = scmp.ne.s32.totalorder %s2326_s27, %s1677_s6  ;;  %p1682_p9 = scmp.lt.s32.totalorder %s2326_s27, %s2379_s4 }
 0x41e   : > { %p1683_p10 = scmp.lt.s32.totalorder %s1681_s9, %s1677_s6 }
 0x41f   : > { %p1679_p7 = pnand %p1678_p4, %p1796_p5 }
 0x420   : > { %p1684_p11 = por %p1683_p10, %p1682_p9 }
 0x421   : > { %p1680_p8 = pneg %p1679_p7 }
 0x423   : > { %p1685_p12 = pnand %p1684_p11, %p1680_p8 }
 0x425   : > { %1688 = shalt.err (!%p1685_p12)
}
 0x426   : > { %s1731_s12 = smov 128   ;;  %s1732_s13 = smov 8  }
 0x427   : > { %1509 = dma.vmem_to_hbm [thread:$0]  (%p1796_p5), %s2328_s20, 2048, %s2326_s27, %s2335_s19, %s1731_s12, %s1731_s12, %s1732_s13  }
 0x428 PF: > { %p1515_p13 = scmp.ge.s32.totalorder %s1723_s18, 2  ;;  %s1234_s14 = sand.u32 1, %s1711_s15  }
 0x429   : > { %s1235_s22 = scalar_lea.sflag [#allocation3], %s1234_s14 }
 0x42a   : > { %p1512_p0 = pnand %p1515_p13, %p1800_p6 }
 0x42c   : > { %p1513_p1 = pneg %p1512_p0 }
 0x42e   : > { %1706 = dma.done.wait (%p1513_p1), %s1235_s22, 2048  }
 0x42f   : > { %1708 = vsyncadd (%p1513_p1), %s1235_s22, 4294965248  ;;  %p14_p2 = scmp.ge.s32.totalorder %s1783_s21, 4   ;;  %s2382_s15 = smov %s1715_s16 }
 0x430   : > { %s2383_s16 = smov %s1719_s17  ;;  %s2384_s17 = smov %s1794_s24 }
 0x431   : > { %s2385_s18 = smov %s1783_s21  ;;  %16 = sbr.rel (!%p14_p2) target bundleno = 3 (0x3), region = 71 }
 0x436   :  { %1240 = vsyncpa [#allocation3], 1 }
 0x437   :  { %1242 = vsyncpa [#allocation3 + $0x1], 1 }

</bundles_post_ra>
